<compile_context>
chip_gen: v5e
topology: v5e:2x2
jax: 0.10.0
libtpu: 0.0.40
codegen_flags: <defaults>
</compile_context>

<pallas_src>
import functools

import jax
import jax.numpy as jnp
from jax import lax
from jax.experimental import pallas as pl
from jax.experimental.pallas import tpu as pltpu


# --------------------------------------------------------------------------- #
# Helpers
# --------------------------------------------------------------------------- #
def _round_up(a, b):
    return ((a + b - 1) // b) * b


def _sublane(dtype):
    """Native sublane granule for a dtype (8 for f32, 16 for bf16, 32 for 8-bit)."""
    return max(8, 32 // jnp.dtype(dtype).itemsize)


def _vmem_budgets():
    """Generation-aware VMEM numbers: (capacity, per-step tile budget, vmem limit)."""
    cap = 64 * 1024 * 1024                      # conservative fallback (v7x-sized)
    try:
        cap = int(pltpu.get_tpu_info().vmem_capacity_bytes) or cap
    except Exception:
        pass
    limit = (cap * 3) // 4                      # ~96 MiB on 128 MiB parts, ~48 MiB on v7x
    budget = (limit * 3) // 4                   # leave double-buffer / pipeline headroom
    return cap, budget, limit


# --------------------------------------------------------------------------- #
# Kernels
# --------------------------------------------------------------------------- #
def _normalize_rows_kernel(x_ref, o_ref, *, scale, eps2):
    """o[i] = scale * x[i] / max(||x[i]||, eps)   (one bandwidth-bound pass)."""
    x = x_ref[...].astype(jnp.float32)
    sx = jnp.sum(x * x, axis=-1, keepdims=True)          # (rows, 1)
    inv = lax.rsqrt(jnp.maximum(sx, eps2)) * scale       # EUP rsqrt
    o_ref[...] = (x * inv).astype(o_ref.dtype)


def _pairwise_dot_kernel(x_ref, y_ref, o_ref):
    """Pure-MXU pairwise dot of pre-normalized row tiles: (tm,H)x(tn,H)->(tm,tn)."""
    o_ref[...] = lax.dot_general(
        x_ref[...], y_ref[...], (((1,), (1,)), ((), ())),
        preferred_element_type=jnp.float32).astype(o_ref.dtype)


def _cosine_rows_kernel(x_ref, y_ref, o_ref, *, inv_temp, eps2):
    """Row-wise cosine similarity for same-shape x/y tiles (HBM-bandwidth bound)."""
    x = x_ref[...]
    y = y_ref[...]
    dot = jnp.sum((x * y).astype(jnp.float32), axis=-1, keepdims=True)
    sx = jnp.sum((x * x).astype(jnp.float32), axis=-1, keepdims=True)
    sy = jnp.sum((y * y).astype(jnp.float32), axis=-1, keepdims=True)
    inv = lax.rsqrt(jnp.maximum(sx * sy, eps2))
    o_ref[...] = (dot * inv * inv_temp).astype(o_ref.dtype)


# --------------------------------------------------------------------------- #
# Wrappers
# --------------------------------------------------------------------------- #
def _normalize_rows(x2d, scale, eps, out_dtype, budget, limit, max_rows):
    n, h = x2d.shape
    in_sz = x2d.dtype.itemsize
    out_sz = jnp.dtype(out_dtype).itemsize
    granule = max(_sublane(x2d.dtype), _sublane(out_dtype))
    tile = min(max_rows, _round_up(max(n, 1), granule))

    def vmem(t):  # 2x-buffered in + 2x-buffered out + in-kernel f32 temporary
        return 2 * t * h * in_sz + 2 * t * h * out_sz + t * h * 4

    while vmem(tile) > budget and tile > granule:
        tile = max(granule, _round_up(tile // 2, granule))

    return pl.pallas_call(
        functools.partial(_normalize_rows_kernel,
                          scale=float(scale), eps2=float(eps) ** 2),
        out_shape=jax.ShapeDtypeStruct((n, h), out_dtype),
        grid=(pl.cdiv(n, tile),),
        in_specs=[pl.BlockSpec((tile, h), lambda i: (i, 0))],
        out_specs=pl.BlockSpec((tile, h), lambda i: (i, 0)),
        compiler_params=pltpu.CompilerParams(
            dimension_semantics=("parallel",),
            vmem_limit_bytes=limit),
    )(x2d)


def _pick_outer_tiles(b1, b2, h, op_itemsize, out_itemsize, budget, max_tile,
                      row_granule):
    tm = min(max_tile, _round_up(max(b1, 1), row_granule))
    tn = min(max_tile, _round_up(max(b2, 1), 128))

    def vmem(tm_, tn_):
        # 2x-buffered operand tiles + 2x-buffered output tile + f32 MXU result
        return (2 * (tm_ + tn_) * h * op_itemsize
                + 2 * tm_ * tn_ * out_itemsize
                + tm_ * tn_ * 4)

    # Shrink alternately (largest side first); never below the MXU granule.
    # TODO(synk): for very large H, add a K grid axis ("arbitrary") with a VMEM
    # accumulator instead of shrinking tm/tn.
    while vmem(tm, tn) > budget and (tm > row_granule or tn > 128):
        if tm >= tn and tm > row_granule:
            tm = max(row_granule, _round_up(tm // 2, row_granule))
        elif tn > 128:
            tn = max(128, _round_up(tn // 2, 128))
        else:
            tm = max(row_granule, _round_up(tm // 2, row_granule))

    # v7x has 2 TensorCores: make sure there are >= 2 grid steps when possible.
    if pl.cdiv(max(b1, 1), tm) * pl.cdiv(max(b2, 1), tn) == 1:
        if b2 > 128:
            tn = max(128, _round_up(pl.cdiv(b2, 2), 128))
        elif b1 > row_granule:
            tm = max(row_granule, _round_up(pl.cdiv(b1, 2), row_granule))
    return tm, tn


def _similarity_outer(x2d, y2d, temp, eps, out_dtype, mxu_dtype):
    """cos(x2d[i], y2d[j]) / temp for all (i, j), broadcast handled by the grid."""
    b1, h = x2d.shape
    b2 = y2d.shape[0]
    cap, budget, limit = _vmem_budgets()
    max_tile = 512 if cap >= (96 << 20) else 256
    max_rows = 2048 if cap >= (96 << 20) else 1024

    # O((B1+B2)*H) prologue: unit-normalize rows, fold 1/temp into x, cast to
    # the MXU operand dtype.  The pairwise kernel below is then a pure matmul.
    xn = _normalize_rows(x2d, 1.0 / float(temp), eps, mxu_dtype, budget, limit, max_rows)
    yn = _normalize_rows(y2d, 1.0, eps, mxu_dtype, budget, limit, max_rows)

    op_sz = jnp.dtype(mxu_dtype).itemsize
    out_sz = jnp.dtype(out_dtype).itemsize
    row_granule = _sublane(mxu_dtype)
    tm, tn = _pick_outer_tiles(b1, b2, h, op_sz, out_sz, budget, max_tile, row_granule)
    gi, gj = pl.cdiv(b1, tm), pl.cdiv(b2, tn)

    # Grid orientation: the operand indexed by the inner grid axis is re-streamed
    # from HBM once per outer step; keep the cheaper-to-restream operand inner.
    stream_y_cost = b1 * h + gi * b2 * h      # x resident, y streamed
    stream_x_cost = b2 * h + gj * b1 * h      # y resident, x streamed
    if stream_y_cost <= stream_x_cost:
        grid = (gi, gj)
        x_map = lambda i, j: (i, 0)
        y_map = lambda i, j: (j, 0)
        o_map = lambda i, j: (i, j)
    else:
        grid = (gj, gi)
        x_map = lambda j, i: (i, 0)
        y_map = lambda j, i: (j, 0)
        o_map = lambda j, i: (i, j)

    return pl.pallas_call(
        _pairwise_dot_kernel,
        out_shape=jax.ShapeDtypeStruct((b1, b2), out_dtype),
        grid=grid,
        in_specs=[
            pl.BlockSpec((tm, h), x_map),
            pl.BlockSpec((tn, h), y_map),
        ],
        out_specs=pl.BlockSpec((tm, tn), o_map),
        compiler_params=pltpu.CompilerParams(
            dimension_semantics=("parallel", "parallel"),
            vmem_limit_bytes=limit),
    )(xn, yn)


def _similarity_rows(x2d, y2d, temp, eps, out_dtype):
    """Row-wise cos(x2d[i], y2d[i]) / temp for same-shape inputs."""
    n, h = x2d.shape
    cap, budget, limit = _vmem_budgets()
    max_rows = 2048 if cap >= (96 << 20) else 1024
    itemsize = max(x2d.dtype.itemsize, y2d.dtype.itemsize)
    granule = max(_sublane(x2d.dtype), _sublane(y2d.dtype), _sublane(out_dtype))

    tile_n = min(max_rows, _round_up(max(n, 1), granule))
    # 2 inputs, double-buffered, + small f32 reduction temporaries.
    while tile_n > granule and (2 * 2 * tile_n * h * itemsize + 3 * tile_n * h) > budget:
        tile_n = max(granule, _round_up(tile_n // 2, granule))

    out = pl.pallas_call(
        functools.partial(_cosine_rows_kernel,
                          inv_temp=1.0 / float(temp), eps2=float(eps) ** 2),
        out_shape=jax.ShapeDtypeStruct((n, 1), out_dtype),
        grid=(pl.cdiv(n, tile_n),),
        in_specs=[
            pl.BlockSpec((tile_n, h), lambda i: (i, 0)),
            pl.BlockSpec((tile_n, h), lambda i: (i, 0)),
        ],
        out_specs=pl.BlockSpec((tile_n, 1), lambda i: (i, 0)),
        compiler_params=pltpu.CompilerParams(
            dimension_semantics=("parallel",),
            vmem_limit_bytes=limit),
    )(x2d, y2d)
    return out[:, 0]


def similarity(x, y, temp, *, eps=1e-8, mxu_dtype=jnp.bfloat16):
    """Cosine similarity along the last axis (with broadcasting), divided by temp.

    `mxu_dtype` is the operand dtype fed to the MXU on the pairwise (SimCSE)
    path; pass jnp.float32 for a full-precision matmul at lower throughput.
    """
    x = jnp.asarray(x)
    y = jnp.asarray(y)
    bshape = jnp.broadcast_shapes(x.shape, y.shape)
    out_dtype = jnp.result_type(x.dtype, y.dtype)
    h = bshape[-1]

    if any(d == 0 for d in bshape):
        return jnp.zeros(bshape[:-1], out_dtype)

    # SimCSE outer-product pattern: broadcast handled by the grid, not HBM.
    if x.ndim == 3 and y.ndim == 3 and x.shape[-1] == y.shape[-1]:
        if x.shape[1] == 1 and y.shape[0] == 1:
            return _similarity_outer(x[:, 0, :], y[0, :, :], temp, eps,
                                     out_dtype, mxu_dtype)
        if x.shape[0] == 1 and y.shape[1] == 1:
            return _similarity_outer(y[:, 0, :], x[0, :, :], temp, eps,
                                     out_dtype, mxu_dtype)

    if x.shape == y.shape:
        out = _similarity_rows(x.reshape(-1, h), y.reshape(-1, h), temp, eps, out_dtype)
        return out.reshape(bshape[:-1])

    # TODO(synk): general N-d broadcasting falls back to materializing the
    # broadcast in HBM; only the SimCSE / same-shape patterns avoid it.
    xb = jnp.broadcast_to(x, bshape).reshape(-1, h)
    yb = jnp.broadcast_to(y, bshape).reshape(-1, h)
    out = _similarity_rows(xb, yb, temp, eps, out_dtype)
    return out.reshape(bshape[:-1])


class Similarity:
    """Functional stand-in for the PyTorch nn.Module."""

    def __init__(self, temp):
        self.temp = temp

    def __call__(self, x, y):
        return similarity(x, y, self.temp)


# --------------------------------------------------------------------------- #
# Reference + test
# --------------------------------------------------------------------------- #
def _reference(x, y, temp, eps=1e-8):
    bshape = jnp.broadcast_shapes(x.shape, y.shape)
    xb = jnp.broadcast_to(x, bshape).astype(jnp.float32)
    yb = jnp.broadcast_to(y, bshape).astype(jnp.float32)
    dot = jnp.sum(xb * yb, axis=-1)
    nx = jnp.linalg.norm(xb, axis=-1)
    ny = jnp.linalg.norm(yb, axis=-1)
    return dot / jnp.maximum(nx * ny, eps) / temp


if __name__ == "__main__":
    temp = 0.05
    sim = Similarity(temp)
    key = jax.random.PRNGKey(0)
    k1, k2, k3, k4 = jax.random.split(key, 4)

    # --- SimCSE usage: sim(z1.unsqueeze(1), z2.unsqueeze(0)) -> (B, B) matrix ---
    B, H = 8, 128
    z1 = jax.random.normal(k1, (B, H), dtype=jnp.float32)
    z2 = jax.random.normal(k2, (B, H), dtype=jnp.float32)

    out_mat = jax.block_until_ready(sim(z1[:, None, :], z2[None, :, :]))
    ref_mat = _reference(z1[:, None, :], z2[None, :, :], temp)
    assert out_mat.shape == (B, B), out_mat.shape
    # Default path feeds the MXU bf16 operands -> bf16-level tolerance.
    assert jnp.allclose(out_mat, ref_mat, atol=5e-2, rtol=5e-2), "outer (bf16) mismatch"

    # Full-precision knob.
    out_mat32 = jax.block_until_ready(
        similarity(z1[:, None, :], z2[None, :, :], temp, mxu_dtype=jnp.float32))
    assert jnp.allclose(out_mat32, ref_mat, atol=2e-2, rtol=2e-2), "outer (f32) mismatch"

    # Non-divisible shapes exercise the partial-edge-block (no jnp.pad) path.
    a = jax.random.normal(k3, (5, 1, 64), dtype=jnp.float32)
    b = jax.random.normal(k4, (1, 7, 64), dtype=jnp.float32)
    out_odd = jax.block_until_ready(similarity(a, b, temp))
    ref_odd = _reference(a, b, temp)
    assert out_odd.shape == (5, 7), out_odd.shape
    assert jnp.allclose(out_odd, ref_odd, atol=5e-2, rtol=5e-2), "odd-shape outer mismatch"

    # --- Same-shape usage: sim(z1, z2) -> (B,)  (row-wise, f32 VPU path) ---
    out_vec = jax.block_until_ready(sim(z1, z2))
    ref_vec = _reference(z1, z2, temp)
    assert out_vec.shape == (B,), out_vec.shape
    assert jnp.allclose(out_vec, ref_vec, atol=1e-4, rtol=1e-4), "row-wise mismatch"

    print("KERNEL_OK")
</pallas_src>

<mosaic_0001>
module attributes {stable_mosaic.version = 11 : i64} {
  func.func @_normalize_rows_kernel(%arg0: i32, %arg1: memref<16x128xf32, #tpu.memory_space<vmem>>, %arg2: memref<16x128xbf16, #tpu.memory_space<vmem>>) attributes {dimension_semantics = [#tpu.dimension_semantics<parallel>], iteration_bounds = array<i64: 1>, scalar_prefetch = 0 : i64, scratch_operands = 0 : i64, tpu.core_type = #tpu.core_type<tc>, window_params = [{transform_indices = @transform_0, window_bounds = array<i64: 16, 128>}, {transform_indices = @transform_1, window_bounds = array<i64: 16, 128>}]} {
    %c0 = arith.constant 0 : index
    %c0_0 = arith.constant 0 : index
    %0 = vector.load %arg1[%c0, %c0_0] : memref<16x128xf32, #tpu.memory_space<vmem>>, vector<16x128xf32>
    %1 = arith.mulf %0, %0 : vector<16x128xf32>
    %cst = arith.constant dense<0.000000e+00> : vector<16xf32>
    %2 = vector.multi_reduction <add>, %1, %cst [1] : vector<16x128xf32> to vector<16xf32>
    %3 = vector.shape_cast %2 : vector<16xf32> to vector<16x1xf32>
    %cst_1 = arith.constant 1.000000e-16 : f32
    %4 = vector.broadcast %cst_1 : f32 to vector<16x1xf32>
    %5 = arith.maximumf %3, %4 : vector<16x1xf32>
    %6 = math.rsqrt %5 : vector<16x1xf32>
    %cst_2 = arith.constant 2.000000e+01 : f32
    %7 = vector.broadcast %cst_2 : f32 to vector<16x1xf32>
    %8 = arith.mulf %6, %7 : vector<16x1xf32>
    %9 = vector.broadcast %8 : vector<16x1xf32> to vector<16x128xf32>
    %10 = arith.mulf %0, %9 : vector<16x128xf32>
    %11 = arith.truncf %10 : vector<16x128xf32> to vector<16x128xbf16>
    %c0_3 = arith.constant 0 : index
    %c0_4 = arith.constant 0 : index
    %12 = vector.load %arg2[%c0_3, %c0_4] : memref<16x128xbf16, #tpu.memory_space<vmem>>, vector<16x128xbf16>
    tpu.vector_store %arg2[%c0_3, %c0_4], %11 {strides = array<i32>} : memref<16x128xbf16, #tpu.memory_space<vmem>>, vector<16x128xbf16>,
    return
  }
  func.func @transform_0(%arg0: i32) -> (i32, i32) {
    %c0_i32 = arith.constant 0 : i32
    %c0_i32_0 = arith.constant 0 : i32
    return %arg0, %c0_i32 : i32, i32
  }
  func.func @transform_1(%arg0: i32) -> (i32, i32) {
    %c0_i32 = arith.constant 0 : i32
    %c0_i32_0 = arith.constant 0 : i32
    return %arg0, %c0_i32 : i32, i32
  }
}

</mosaic_0001>

<bundles_post_ra>
// kernel: tpu_custom_call.1
= control target key start
LH: loop header
LB: loop body
LE: loop exit
PB: predicated region body
PF: predicated region fallthrough
CT: control target
= control target key end

     0   :  { %6 = vsyncpa [#allocation3], 0  ;;  %s171_s0 = inlined_call_operand.hbm [shape: f32[8,128], index: 0, kind: input, shape index: {}]   ;;  %s172_s1 = inlined_call_operand.hbm [shape: bf16[8,128], index: 1, kind: output, shape index: {}]  }
   0x1   :  { %7 = vsyncpa [#allocation4], 0 }
   0x2   :  { %11 = vsyncadd [#allocation3], 128  ;;  %s12_s8 = sshll.u32 %s171_s0, 4  ;;  %s149_s9 = smov [#allocation2]   ;;  %s13_s8 = int_to_ptr.hbm [resolvable:$true] %s12_s8 }
   0x3   :  { %s14_s10 = sshll.u32 %s149_s9, 4  ;;  %s150_s11 = smov 128   ;;  %s15_s10 = int_to_ptr.vmem [resolvable:$true] %s14_s10 }
   0x4   :  { %s151_s12 = smov 8  }
   0x5   :  { %20 = dma.hbm_to_vmem [thread:$0]  %s13_s8, 128, %s15_s10, [#allocation3], %s150_s11, %s150_s11, %s151_s12  }
   0x6   :  { %145 = dma.done.wait [#allocation3], 256  }
   0x7   :  { %146 = vsyncadd [#allocation3], 4294967040  ;;  %v25_v0 = vld [vmem:[#allocation2] sm:$0xff]  ;;  %v26_v2 = vld [vmem:[#allocation2 + $0x8] sm:$0xff] }
   0x8   :  { %v27_v1 = vmul.f32 %v25_v0, %v25_v0  ;;  %v28_v3 = vmul.f32 %v26_v2, %v26_v2 }
   0xa   :  { %29 = vadd.xlane.f32.xlu0 %v27_v1 }
  0x12   :  { %31 = vadd.xlane.f32.xlu0 %v28_v3 }
  0x7d   :  { %v30_v4 = vpop.xlane.xlu0 %29 }
  0x7e   :  { %v33_v5 = vmax.f32 %v30_v4, 1e-16 }
  0x80   :  { %93 = vrsqrt.f32 %v33_v5  ;;  %vm41_vm1 = vweird.f32 %v33_v5 }
  0x85   :  { %v32_v6 = vpop.xlane.xlu0 %31 }
  0x86   :  { %v94_v7 = vpop.eup %93  ;;  %v34_v8 = vmax.f32 %v32_v6, 1e-16 }
  0x87   :  { %v36_v9 = vmul.f32 %v94_v7, %v33_v5  ;;  %vm42_vm0 = vweird.f32 %v94_v7 }
  0x88   :  { %95 = vrsqrt.f32 %v34_v8  ;;  %vm43_vm2 = vmor %vm41_vm1, %vm42_vm0  ;;  %vm51_vm4 = vweird.f32 %v34_v8 }
  0x89   :  { %v37_v10 = vmul.f32 %v94_v7, %v36_v9 }
  0x8b   :  { %v38_v11 = vmul.f32 0.5, %v37_v10 }
  0x8d   :  { %v39_v12 = vsub.f32 1.5, %v38_v11 }
  0x8e   :  { %v96_v13 = vpop.eup %95 }
  0x8f   :  { %v46_v14 = vmul.f32 %v96_v13, %v34_v8  ;;  %v40_v15 = vmul.f32 %v94_v7, %v39_v12  ;;  %vm52_vm3 = vweird.f32 %v96_v13 }
  0x90   :  { %vm53_vm5 = vmor %vm51_vm4, %vm52_vm3 }
  0x91   :  { %v47_v16 = vmul.f32 %v96_v13, %v46_v14  ;;  %v44_v18 = vsel %vm43_vm2, %v94_v7, %v40_v15 }
  0x92   :  { %v55_v21 = vmul.f32 20.0, %v44_v18 }
  0x93   :  { %v48_v17 = vmul.f32 0.5, %v47_v16 }
  0x94   :  { %v57_v24 = vmul.f32 %v55_v21, %v25_v0 }
  0x95   :  { %v49_v19 = vsub.f32 1.5, %v48_v17 }
  0x97   :  { %v50_v20 = vmul.f32 %v96_v13, %v49_v19 }
  0x99   :  { %v54_v22 = vsel %vm53_vm5, %v96_v13, %v50_v20 }
  0x9a   :  { %v56_v23 = vmul.f32 20.0, %v54_v22 }
  0x9c   :  { %v58_v25 = vmul.f32 %v56_v23, %v26_v2 }
  0x9e   :  { %v85_v26 = vpack.c.bf16 %v58_v25, %v57_v24 }
  0xa0   :  { %86 = vst [vmem:[#allocation5] sm:$0xff] %v85_v26  }
  0xa1   :  { %66 = vsyncadd [#allocation4], 64  ;;  %s69_s14 = sshll.u32 %s172_s1, 4  ;;  %s152_s15 = smov [#allocation5]   ;;  %s70_s14 = int_to_ptr.hbm [resolvable:$true] %s69_s14 }
  0xa2   :  { %s67_s16 = sshll.u32 %s152_s15, 4  ;;  %s153_s17 = smov 64   ;;  %s68_s16 = int_to_ptr.vmem [resolvable:$true] %s67_s16 }
  0xa3   :  { %s154_s18 = smov 4  }
  0xa4   :  { %75 = dma.vmem_to_hbm [thread:$0]  %s68_s16, 64, %s70_s14, [#allocation4], %s153_s17, %s153_s17, %s154_s18  }
  0xa5   :  { %147 = dma.done.wait [#allocation4], 128  }
  0xa6   :  { %148 = vsyncadd [#allocation4], 4294967168 }
  0xa7   :  { %80 = vsyncpa [#allocation3], 1 }
  0xa8   :  { %81 = vsyncpa [#allocation4], 1 }

</bundles_post_ra>
